<compile_context>
chip_gen: v5e
topology: v5e:2x2
jax: 0.10.0
libtpu: 0.0.40
codegen_flags: <defaults>
</compile_context>

<pallas_src>
import functools

import jax
import jax.numpy as jnp
from jax.experimental import pallas as pl
from jax.experimental.pallas import tpu as pltpu


# ----------------------------------------------------------------------------- kernel ----


def _make_bilstm_layer_kernel(T, Bp, H):
    """One bidirectional LSTM layer; both directions' full time loops inside the kernel.

    xg_ref holds pre-projected gates for BOTH directions:
      xg[t, b, 0:4H]   = x_t @ W_ih_fwd^T + (b_ih_fwd + b_hh_fwd)
      xg[t, b, 4H:8H]  = x_t @ W_ih_rev^T + (b_ih_rev + b_hh_rev)
    so each recurrent step only does the small h_prev @ W_hh matmul + gate math.
    """
    G4 = 4 * H

    def kernel(maxlen_ref, len_ref, xg_ref, whh_f_ref, whh_r_ref, out_ref):
        # Timesteps >= max_len are never touched by the loop -> pre-zero the output
        # (matches pad_packed_sequence zero padding).
        out_ref[...] = jnp.zeros_like(out_ref)

        lens = len_ref[...]          # (Bp, 1) int32 — hoisted out of the loop
        max_len = maxlen_ref[0]      # scalar in SMEM (scalar prefetch)

        def cell(xgates, h_prev, c_prev, whh_ref, t):
            # input projection + bias already folded into xgates (precomputed outside).
            gates = xgates + jnp.dot(h_prev, whh_ref[...],
                                     preferred_element_type=jnp.float32)   # (Bp, 4H)
            # PyTorch gate order: i, f, g, o
            i_g = jax.nn.sigmoid(gates[:, 0 * H:1 * H])
            f_g = jax.nn.sigmoid(gates[:, 1 * H:2 * H])
            g_g = jnp.tanh(gates[:, 2 * H:3 * H])
            o_g = jax.nn.sigmoid(gates[:, 3 * H:4 * H])
            c_new = f_g * c_prev + i_g * g_g
            h_new = o_g * jnp.tanh(c_new)
            valid = lens > t                               # (Bp, 1) broadcasts over H
            h_upd = jnp.where(valid, h_new, h_prev)
            c_upd = jnp.where(valid, c_new, c_prev)
            out_t = jnp.where(valid, h_new, jnp.zeros_like(h_new))
            return h_upd, c_upd, out_t

        def step(s, carry):
            hf, cf, hr, cr = carry
            t_f = s                        # forward walks 0 .. max_len-1
            t_r = max_len - 1 - s          # reverse walks max_len-1 .. 0
            xg_f = xg_ref[t_f, :, 0:G4]        # lane-aligned (4H = 128) slice
            xg_r = xg_ref[t_r, :, G4:2 * G4]
            hf, cf, of = cell(xg_f, hf, cf, whh_f_ref, t_f)
            hr, cr, orr = cell(xg_r, hr, cr, whh_r_ref, t_r)
            out_ref[t_f, :, 0:H] = of            # forward half of fused output
            out_ref[t_r, :, H:2 * H] = orr       # reverse half of fused output
            return (hf, cf, hr, cr)

        z = jnp.zeros((Bp, H), jnp.float32)
        jax.lax.fori_loop(0, max_len, step, (z, z, z, z))

    return kernel


def _bilstm_layer(max_len_arr, len_col, xg, whh_f_t, whh_r_t):
    """xg: (T, Bp, 8H) pre-projected gates (fwd gates in [..., :4H], rev in [..., 4H:]);
    whh_*_t: (H, 4H); len_col: (Bp, 1) int32; max_len_arr: (1,) int32.
    Returns (T, Bp, 2H) f32 (forward half in [..., :H])."""
    T, Bp, G8 = xg.shape
    H = G8 // 8
    kernel = _make_bilstm_layer_kernel(T, Bp, H)

    # Advisory cost hints (lets XLA schedule around the sequential kernel).
    flops = 2 * T * (2 * Bp * H * 4 * H) + 2 * T * Bp * 12 * H
    transcendentals = 2 * T * Bp * 5 * H
    bytes_accessed = 4 * (T * Bp * 8 * H + T * Bp * 2 * H + 2 * H * 4 * H + Bp)

    # Explicit VMEM budget (inputs + output + weights, double-buffer margin),
    # clamped so it stays within v7x's smaller physical VMEM.
    vmem_need = 4 * (T * Bp * 8 * H + T * Bp * 2 * H + 2 * H * 4 * H + Bp)
    vmem_limit = int(min(max(4 * vmem_need, 8 * 1024 * 1024), 48 * 1024 * 1024))

    grid_spec = pltpu.PrefetchScalarGridSpec(
        num_scalar_prefetch=1,          # max_len -> SMEM
        grid=(1,),
        in_specs=[
            pl.BlockSpec((Bp, 1), lambda i, *_: (0, 0)),
            pl.BlockSpec((T, Bp, 8 * H), lambda i, *_: (0, 0, 0)),
            pl.BlockSpec((H, 4 * H), lambda i, *_: (0, 0)),
            pl.BlockSpec((H, 4 * H), lambda i, *_: (0, 0)),
        ],
        out_specs=pl.BlockSpec((T, Bp, 2 * H), lambda i, *_: (0, 0, 0)),
    )

    return pl.pallas_call(
        kernel,
        out_shape=jax.ShapeDtypeStruct((T, Bp, 2 * H), jnp.float32),
        grid_spec=grid_spec,
        compiler_params=pltpu.CompilerParams(
            dimension_semantics=("arbitrary",),
            vmem_limit_bytes=vmem_limit,
        ),
        cost_estimate=pl.CostEstimate(
            flops=flops,
            transcendentals=transcendentals,
            bytes_accessed=bytes_accessed,
        ),
    )(max_len_arr, len_col, xg, whh_f_t, whh_r_t)


# ----------------------------------------------------------------------------- wrapper ---


def init_params(key, input_size, hidden_size, num_layers, bidirectional=True):
    """Deterministic LSTM params, same shapes as nn.LSTM (uniform +-1/sqrt(H))."""
    num_dirs = 2 if bidirectional else 1
    bound = 1.0 / jnp.sqrt(jnp.float32(hidden_size))
    params = {}
    for layer in range(num_layers):
        layer_in = input_size if layer == 0 else hidden_size * num_dirs
        for d in range(num_dirs):
            key, k1, k2, k3, k4 = jax.random.split(key, 5)
            params[(layer, d)] = dict(
                w_ih=jax.random.uniform(k1, (4 * hidden_size, layer_in),
                                        jnp.float32, -bound, bound),
                w_hh=jax.random.uniform(k2, (4 * hidden_size, hidden_size),
                                        jnp.float32, -bound, bound),
                b_ih=jax.random.uniform(k3, (4 * hidden_size,),
                                        jnp.float32, -bound, bound),
                b_hh=jax.random.uniform(k4, (4 * hidden_size,),
                                        jnp.float32, -bound, bound),
            )
    return params


@functools.partial(jax.jit, static_argnames=("num_layers",))
def seq2seq_encoder(x, lengths, params, num_layers=2):
    """x: (B, T, input_size) f32; lengths: (B,) int.  Returns (B, T, 2*hidden_size).
    Equivalent to sort -> pack -> bi-LSTM -> unpack -> restore (dropout=0).
    Assumes max(lengths) == T (pad_packed_sequence pads to max(lengths))."""
    B, T, _ = x.shape
    Bp = ((B + 7) // 8) * 8                                   # pad batch to f32 sublane

    x_tm = jnp.transpose(x, (1, 0, 2)).astype(jnp.float32)    # (T, B, D) time-major
    x_tm = jnp.pad(x_tm, ((0, 0), (0, Bp - B), (0, 0)))       # (T, Bp, D)
    lens_i = lengths.astype(jnp.int32)
    len_col = jnp.pad(lens_i, (0, Bp - B)).reshape(Bp, 1)     # padded rows -> length 0
    max_len_arr = jnp.max(lens_i).astype(jnp.int32).reshape(1)

    layer_in = x_tm
    for layer in range(num_layers):
        pf = params[(layer, 0)]   # forward direction
        pr = params[(layer, 1)]   # reverse direction
        # Single big input-projection matmul for BOTH directions (bias folded in):
        # (T*Bp, D) @ (D, 8H) -> (T, Bp, 8H).
        w_cat = jnp.concatenate([pf["w_ih"], pr["w_ih"]], axis=0)          # (8H, D)
        b_cat = jnp.concatenate([pf["b_ih"] + pf["b_hh"],
                                 pr["b_ih"] + pr["b_hh"]], axis=0)          # (8H,)
        xg = (jnp.einsum("tbd,gd->tbg", layer_in, w_cat,
                         preferred_element_type=jnp.float32)
              + b_cat[None, None, :])
        layer_in = _bilstm_layer(
            max_len_arr, len_col, xg,
            jnp.transpose(pf["w_hh"]),   # (H, 4H)
            jnp.transpose(pr["w_hh"]),   # (H, 4H)
        )  # (T, Bp, 2H): forward in [..., :H], reverse in [..., H:]

    return jnp.transpose(layer_in, (1, 0, 2))[:B]             # (B, T, 2H)


# --------------------------------------------------------------------- pure-JAX reference


def _ref_lstm_dir(x, lengths, w_ih, w_hh, b_ih, b_hh, reverse):
    """x: (B, T, D) -> (B, T, H); packed-sequence semantics via length masking."""
    B, T, _ = x.shape
    H = w_hh.shape[1]

    def step(carry, xt_t):
        h, c = carry
        xt, t = xt_t
        gates = xt @ w_ih.T + b_ih + h @ w_hh.T + b_hh
        i = jax.nn.sigmoid(gates[:, 0 * H:1 * H])
        f = jax.nn.sigmoid(gates[:, 1 * H:2 * H])
        g = jnp.tanh(gates[:, 2 * H:3 * H])
        o = jax.nn.sigmoid(gates[:, 3 * H:4 * H])
        c_new = f * c + i * g
        h_new = o * jnp.tanh(c_new)
        valid = (lengths > t)[:, None]
        h = jnp.where(valid, h_new, h)
        c = jnp.where(valid, c_new, c)
        out = jnp.where(valid, h_new, 0.0)
        return (h, c), out

    xs = jnp.transpose(x, (1, 0, 2))
    ts = jnp.arange(T)
    if reverse:
        xs, ts = xs[::-1], ts[::-1]
    (_, _), outs = jax.lax.scan(step, (jnp.zeros((B, H)), jnp.zeros((B, H))), (xs, ts))
    if reverse:
        outs = outs[::-1]
    return jnp.transpose(outs, (1, 0, 2))


def ref_encoder(x, lengths, params, num_layers):
    h = x.astype(jnp.float32)
    for layer in range(num_layers):
        pf, pr = params[(layer, 0)], params[(layer, 1)]
        of = _ref_lstm_dir(h, lengths, pf["w_ih"], pf["w_hh"], pf["b_ih"], pf["b_hh"], False)
        orr = _ref_lstm_dir(h, lengths, pr["w_ih"], pr["w_hh"], pr["b_ih"], pr["b_hh"], True)
        h = jnp.concatenate([of, orr], axis=-1)
    return h


# ------------------------------------------------------------------------------- main ----


if __name__ == "__main__":
    B, T = 2, 8
    input_size, hidden_size, num_layers = 16, 32, 2

    key = jax.random.PRNGKey(0)
    k_x, k_p = jax.random.split(key)
    x = jax.random.normal(k_x, (B, T, input_size), jnp.float32)
    # max(lengths) == T so pad_packed_sequence's padded length matches T.
    lengths = jnp.array([T, 5], dtype=jnp.int32)

    params = init_params(k_p, input_size, hidden_size, num_layers)

    out = seq2seq_encoder(x, lengths, params, num_layers=num_layers)
    out = jax.block_until_ready(out)

    assert out.shape == (B, T, 2 * hidden_size)
    assert bool(jnp.all(jnp.isfinite(out)))
    # Padded timesteps of the second sequence must be exactly zero (packed semantics).
    assert bool(jnp.all(out[1, 5:, :] == 0.0))
    # Numerical check against a pure-JAX reference bi-LSTM with the same masking semantics.
    ref = ref_encoder(x, lengths, params, num_layers)
    assert bool(jnp.allclose(out, ref, atol=1e-4, rtol=1e-4))

    print("KERNEL_OK")
</pallas_src>

<mosaic_0001>
module attributes {stable_mosaic.version = 11 : i64} {
  func.func @kernel(%arg0: i32, %arg1: memref<1xi32, #tpu.memory_space<smem>>, %arg2: memref<8x1xi32, #tpu.memory_space<vmem>>, %arg3: memref<8x8x256xf32, #tpu.memory_space<vmem>>, %arg4: memref<32x128xf32, #tpu.memory_space<vmem>>, %arg5: memref<32x128xf32, #tpu.memory_space<vmem>>, %arg6: memref<8x8x64xf32, #tpu.memory_space<vmem>>) attributes {dimension_semantics = [#tpu.dimension_semantics<arbitrary>], iteration_bounds = array<i64: 1>, scalar_prefetch = 1 : i64, scratch_operands = 0 : i64, tpu.core_type = #tpu.core_type<tc>, window_params = [{pipeline_mode = #tpu.pipeline_mode<synchronous>, transform_indices = @transform_0, window_bounds = array<i64: 8, 1>}, {pipeline_mode = #tpu.pipeline_mode<synchronous>, transform_indices = @transform_1, window_bounds = array<i64: 8, 8, 256>}, {pipeline_mode = #tpu.pipeline_mode<synchronous>, transform_indices = @transform_2, window_bounds = array<i64: 32, 128>}, {pipeline_mode = #tpu.pipeline_mode<synchronous>, transform_indices = @transform_3, window_bounds = array<i64: 32, 128>}, {pipeline_mode = #tpu.pipeline_mode<synchronous>, transform_indices = @transform_4, window_bounds = array<i64: 8, 8, 64>}]} {
    %cst = arith.constant 0.000000e+00 : f32
    %0 = vector.broadcast %cst : f32 to vector<8x8x64xf32>
    %c0 = arith.constant 0 : index
    %c0_0 = arith.constant 0 : index
    %c0_1 = arith.constant 0 : index
    %1 = vector.load %arg6[%c0, %c0_0, %c0_1] : memref<8x8x64xf32, #tpu.memory_space<vmem>>, vector<8x8x64xf32>
    tpu.vector_store %arg6[%c0, %c0_0, %c0_1], %0 {strides = array<i32>} : memref<8x8x64xf32, #tpu.memory_space<vmem>>, vector<8x8x64xf32>,
    %c0_2 = arith.constant 0 : index
    %c0_3 = arith.constant 0 : index
    %2 = vector.load %arg2[%c0_2, %c0_3] : memref<8x1xi32, #tpu.memory_space<vmem>>, vector<8x1xi32>
    %c0_4 = arith.constant 0 : index
    %3 = memref.load %arg1[%c0_4] : memref<1xi32, #tpu.memory_space<smem>>
    %cst_5 = arith.constant 0.000000e+00 : f32
    %4 = vector.broadcast %cst_5 : f32 to vector<8x32xf32>
    %c0_i32 = arith.constant 0 : i32
    %5 = arith.subi %3, %c0_i32 : i32
    %6 = arith.addi %c0_i32, %5 : i32
    %c1_i32 = arith.constant 1 : i32
    %7:4 = scf.for %arg7 = %c0_i32 to %6 step %c1_i32 iter_args(%arg8 = %4, %arg9 = %4, %arg10 = %4, %arg11 = %4) -> (vector<8x32xf32>, vector<8x32xf32>, vector<8x32xf32>, vector<8x32xf32>)  : i32 {
      %c1_i32_6 = arith.constant 1 : i32
      %8 = arith.subi %3, %c1_i32_6 : i32
      %9 = arith.subi %8, %arg7 : i32
      %10 = arith.index_cast %arg7 : i32 to index
      %c0_7 = arith.constant 0 : index
      %c0_8 = arith.constant 0 : index
      %11 = vector.load %arg3[%10, %c0_7, %c0_8] : memref<8x8x256xf32, #tpu.memory_space<vmem>>, vector<1x8x128xf32>
      %12 = vector.shape_cast %11 : vector<1x8x128xf32> to vector<8x128xf32>
      %13 = arith.index_cast %9 : i32 to index
      %c0_9 = arith.constant 0 : index
      %c128 = arith.constant 128 : index
      %14 = vector.load %arg3[%13, %c0_9, %c128] : memref<8x8x256xf32, #tpu.memory_space<vmem>>, vector<1x8x128xf32>
      %15 = vector.shape_cast %14 : vector<1x8x128xf32> to vector<8x128xf32>
      %c0_10 = arith.constant 0 : index
      %c0_11 = arith.constant 0 : index
      %16 = vector.load %arg4[%c0_10, %c0_11] : memref<32x128xf32, #tpu.memory_space<vmem>>, vector<32x128xf32>
      %cst_12 = arith.constant dense<0.000000e+00> : vector<8x128xf32>
      %17 = tpu.matmul %arg8, %16, %cst_12 {dimension_numbers = #tpu.dot_dimension_numbers<[1], [0], [0], [1], [0, 0, 1, 1], [], []>} : vector<8x32xf32>, vector<32x128xf32>, vector<8x128xf32> -> vector<8x128xf32>
      %18 = arith.addf %12, %17 : vector<8x128xf32>
      %19 = vector.extract_strided_slice %18 {offsets = [0, 0], sizes = [8, 32], strides = [1, 1]} : vector<8x128xf32> to vector<8x32xf32>
      %20 = arith.negf %19 : vector<8x32xf32>
      %21 = math.exp %20 : vector<8x32xf32>
      %cst_13 = arith.constant 1.000000e+00 : f32
      %22 = vector.broadcast %cst_13 : f32 to vector<8x32xf32>
      %23 = arith.addf %22, %21 : vector<8x32xf32>
      %24 = arith.divf %22, %23 : vector<8x32xf32>
      %25 = vector.extract_strided_slice %18 {offsets = [0, 32], sizes = [8, 32], strides = [1, 1]} : vector<8x128xf32> to vector<8x32xf32>
      %26 = arith.negf %25 : vector<8x32xf32>
      %27 = math.exp %26 : vector<8x32xf32>
      %cst_14 = arith.constant 1.000000e+00 : f32
      %28 = vector.broadcast %cst_14 : f32 to vector<8x32xf32>
      %29 = arith.addf %28, %27 : vector<8x32xf32>
      %30 = arith.divf %28, %29 : vector<8x32xf32>
      %31 = vector.extract_strided_slice %18 {offsets = [0, 64], sizes = [8, 32], strides = [1, 1]} : vector<8x128xf32> to vector<8x32xf32>
      %32 = math.tanh %31 : vector<8x32xf32>
      %33 = vector.extract_strided_slice %18 {offsets = [0, 96], sizes = [8, 32], strides = [1, 1]} : vector<8x128xf32> to vector<8x32xf32>
      %34 = arith.negf %33 : vector<8x32xf32>
      %35 = math.exp %34 : vector<8x32xf32>
      %cst_15 = arith.constant 1.000000e+00 : f32
      %36 = vector.broadcast %cst_15 : f32 to vector<8x32xf32>
      %37 = arith.addf %36, %35 : vector<8x32xf32>
      %38 = arith.divf %36, %37 : vector<8x32xf32>
      %39 = arith.mulf %30, %arg9 : vector<8x32xf32>
      %40 = arith.mulf %24, %32 : vector<8x32xf32>
      %41 = arith.addf %39, %40 : vector<8x32xf32>
      %42 = math.tanh %41 : vector<8x32xf32>
      %43 = arith.mulf %38, %42 : vector<8x32xf32>
      %44 = vector.broadcast %arg7 : i32 to vector<8x1xi32>
      %45 = arith.cmpi sgt, %2, %44 : vector<8x1xi32>
      %46 = vector.shape_cast %45 : vector<8x1xi1> to vector<8x1xi1>
      %47 = vector.broadcast %46 : vector<8x1xi1> to vector<8x32xi1>
      %48 = arith.select %47, %43, %arg8 : vector<8x32xi1>, vector<8x32xf32>
      %49 = vector.shape_cast %45 : vector<8x1xi1> to vector<8x1xi1>
      %50 = vector.broadcast %49 : vector<8x1xi1> to vector<8x32xi1>
      %51 = arith.select %50, %41, %arg9 : vector<8x32xi1>, vector<8x32xf32>
      %cst_16 = arith.constant 0.000000e+00 : f32
      %52 = vector.broadcast %cst_16 : f32 to vector<8x32xf32>
      %53 = vector.shape_cast %45 : vector<8x1xi1> to vector<8x1xi1>
      %54 = vector.broadcast %53 : vector<8x1xi1> to vector<8x32xi1>
      %55 = arith.select %54, %43, %52 : vector<8x32xi1>, vector<8x32xf32>
      %c0_17 = arith.constant 0 : index
      %c0_18 = arith.constant 0 : index
      %56 = vector.load %arg5[%c0_17, %c0_18] : memref<32x128xf32, #tpu.memory_space<vmem>>, vector<32x128xf32>
      %cst_19 = arith.constant dense<0.000000e+00> : vector<8x128xf32>
      %57 = tpu.matmul %arg10, %56, %cst_19 {dimension_numbers = #tpu.dot_dimension_numbers<[1], [0], [0], [1], [0, 0, 1, 1], [], []>} : vector<8x32xf32>, vector<32x128xf32>, vector<8x128xf32> -> vector<8x128xf32>
      %58 = arith.addf %15, %57 : vector<8x128xf32>
      %59 = vector.extract_strided_slice %58 {offsets = [0, 0], sizes = [8, 32], strides = [1, 1]} : vector<8x128xf32> to vector<8x32xf32>
      %60 = arith.negf %59 : vector<8x32xf32>
      %61 = math.exp %60 : vector<8x32xf32>
      %cst_20 = arith.constant 1.000000e+00 : f32
      %62 = vector.broadcast %cst_20 : f32 to vector<8x32xf32>
      %63 = arith.addf %62, %61 : vector<8x32xf32>
      %64 = arith.divf %62, %63 : vector<8x32xf32>
      %65 = vector.extract_strided_slice %58 {offsets = [0, 32], sizes = [8, 32], strides = [1, 1]} : vector<8x128xf32> to vector<8x32xf32>
      %66 = arith.negf %65 : vector<8x32xf32>
      %67 = math.exp %66 : vector<8x32xf32>
      %cst_21 = arith.constant 1.000000e+00 : f32
      %68 = vector.broadcast %cst_21 : f32 to vector<8x32xf32>
      %69 = arith.addf %68, %67 : vector<8x32xf32>
      %70 = arith.divf %68, %69 : vector<8x32xf32>
      %71 = vector.extract_strided_slice %58 {offsets = [0, 64], sizes = [8, 32], strides = [1, 1]} : vector<8x128xf32> to vector<8x32xf32>
      %72 = math.tanh %71 : vector<8x32xf32>
      %73 = vector.extract_strided_slice %58 {offsets = [0, 96], sizes = [8, 32], strides = [1, 1]} : vector<8x128xf32> to vector<8x32xf32>
      %74 = arith.negf %73 : vector<8x32xf32>
      %75 = math.exp %74 : vector<8x32xf32>
      %cst_22 = arith.constant 1.000000e+00 : f32
      %76 = vector.broadcast %cst_22 : f32 to vector<8x32xf32>
      %77 = arith.addf %76, %75 : vector<8x32xf32>
      %78 = arith.divf %76, %77 : vector<8x32xf32>
      %79 = arith.mulf %70, %arg11 : vector<8x32xf32>
      %80 = arith.mulf %64, %72 : vector<8x32xf32>
      %81 = arith.addf %79, %80 : vector<8x32xf32>
      %82 = math.tanh %81 : vector<8x32xf32>
      %83 = arith.mulf %78, %82 : vector<8x32xf32>
      %84 = vector.broadcast %9 : i32 to vector<8x1xi32>
      %85 = arith.cmpi sgt, %2, %84 : vector<8x1xi32>
      %86 = vector.shape_cast %85 : vector<8x1xi1> to vector<8x1xi1>
      %87 = vector.broadcast %86 : vector<8x1xi1> to vector<8x32xi1>
      %88 = arith.select %87, %83, %arg10 : vector<8x32xi1>, vector<8x32xf32>
      %89 = vector.shape_cast %85 : vector<8x1xi1> to vector<8x1xi1>
      %90 = vector.broadcast %89 : vector<8x1xi1> to vector<8x32xi1>
      %91 = arith.select %90, %81, %arg11 : vector<8x32xi1>, vector<8x32xf32>
      %cst_23 = arith.constant 0.000000e+00 : f32
      %92 = vector.broadcast %cst_23 : f32 to vector<8x32xf32>
      %93 = vector.shape_cast %85 : vector<8x1xi1> to vector<8x1xi1>
      %94 = vector.broadcast %93 : vector<8x1xi1> to vector<8x32xi1>
      %95 = arith.select %94, %83, %92 : vector<8x32xi1>, vector<8x32xf32>
      %96 = arith.index_cast %arg7 : i32 to index
      %c0_24 = arith.constant 0 : index
      %c0_25 = arith.constant 0 : index
      %97 = vector.load %arg6[%96, %c0_24, %c0_25] : memref<8x8x64xf32, #tpu.memory_space<vmem>>, vector<1x8x32xf32>
      %98 = vector.shape_cast %97 : vector<1x8x32xf32> to vector<8x32xf32>
      %99 = vector.shape_cast %55 : vector<8x32xf32> to vector<1x8x32xf32>
      tpu.vector_store %arg6[%96, %c0_24, %c0_25], %99 {strides = array<i32>} : memref<8x8x64xf32, #tpu.memory_space<vmem>>, vector<1x8x32xf32>,
      %100 = arith.index_cast %9 : i32 to index
      %c0_26 = arith.constant 0 : index
      %c32 = arith.constant 32 : index
      %101 = vector.load %arg6[%100, %c0_26, %c32] : memref<8x8x64xf32, #tpu.memory_space<vmem>>, vector<1x8x32xf32>
      %102 = vector.shape_cast %101 : vector<1x8x32xf32> to vector<8x32xf32>
      %103 = vector.shape_cast %95 : vector<8x32xf32> to vector<1x8x32xf32>
      tpu.vector_store %arg6[%100, %c0_26, %c32], %103 {strides = array<i32>} : memref<8x8x64xf32, #tpu.memory_space<vmem>>, vector<1x8x32xf32>,
      scf.yield %48, %51, %88, %91 : vector<8x32xf32>, vector<8x32xf32>, vector<8x32xf32>, vector<8x32xf32>
    }
    return
  }
  func.func @transform_0(%arg0: i32, %arg1: memref<1xi32, #tpu.memory_space<smem>>) -> (i32, i32) {
    %c0_i32 = arith.constant 0 : i32
    %c0_i32_0 = arith.constant 0 : i32
    %c0_i32_1 = arith.constant 0 : i32
    return %c0_i32, %c0_i32_0 : i32, i32
  }
  func.func @transform_1(%arg0: i32, %arg1: memref<1xi32, #tpu.memory_space<smem>>) -> (i32, i32, i32) {
    %c0_i32 = arith.constant 0 : i32
    %c0_i32_0 = arith.constant 0 : i32
    %c0_i32_1 = arith.constant 0 : i32
    %c0_i32_2 = arith.constant 0 : i32
    return %c0_i32, %c0_i32_0, %c0_i32_1 : i32, i32, i32
  }
  func.func @transform_2(%arg0: i32, %arg1: memref<1xi32, #tpu.memory_space<smem>>) -> (i32, i32) {
    %c0_i32 = arith.constant 0 : i32
    %c0_i32_0 = arith.constant 0 : i32
    %c0_i32_1 = arith.constant 0 : i32
    return %c0_i32, %c0_i32_0 : i32, i32
  }
  func.func @transform_3(%arg0: i32, %arg1: memref<1xi32, #tpu.memory_space<smem>>) -> (i32, i32) {
    %c0_i32 = arith.constant 0 : i32
    %c0_i32_0 = arith.constant 0 : i32
    %c0_i32_1 = arith.constant 0 : i32
    return %c0_i32, %c0_i32_0 : i32, i32
  }
  func.func @transform_4(%arg0: i32, %arg1: memref<1xi32, #tpu.memory_space<smem>>) -> (i32, i32, i32) {
    %c0_i32 = arith.constant 0 : i32
    %c0_i32_0 = arith.constant 0 : i32
    %c0_i32_1 = arith.constant 0 : i32
    %c0_i32_2 = arith.constant 0 : i32
    return %c0_i32, %c0_i32_0, %c0_i32_1 : i32, i32, i32
  }
}

</mosaic_0001>

<bundles_post_ra>
// kernel: seq2seq_encoder.2
= control target key start
LH: loop header
LB: loop body
LE: loop exit
PB: predicated region body
PF: predicated region fallthrough
CT: control target
= control target key end

     0   :  { %vm19_vm0 = vcmask 523264   ;;  %v365_v0 = vmov 0.0   ;;  %s548_s0 = inlined_call_operand.<no memory space> [shape: s32[1], index: 0, kind: input, shape index: {}]   ;;  %s549_s1 = inlined_call_operand.vmem [shape: s32[8,1], index: 1, kind: input, shape index: {}]   ;;  %s550_s2 = inlined_call_operand.vmem [shape: f32[8,8,256], index: 2, kind: input, shape index: {}]   ;;  %s551_s3 = inlined_call_operand.vmem [shape: f32[32,128], index: 3, kind: input, shape index: {}]   ;;  %s552_s4 = inlined_call_operand.vmem [shape: f32[32,128], index: 4, kind: input, shape index: {}]   ;;  %s553_s5 = inlined_call_operand.vmem [shape: f32[8,8,64], index: 5, kind: output, shape index: {}]  }
   0x1   :  { %20 = vst.msk [vmem:[%s553_s5] sm:$0xff] %vm19_vm0, %v365_v0  ;;  %v405_v1 = vld [vmem:[%s549_s1] sm:$0xff]  ;;  %p249_p0 = scmp.le.s32.totalorder %s548_s0, 0 }
   0x2   :  { %21 = vst.msk [vmem:[%s553_s5 + $0x8] sm:$0xff] %vm19_vm0, %v365_v0  ;;  %s439_s12 = smov (!%p249_p0), 0  }
   0x3   :  { %22 = vst.msk [vmem:[%s553_s5 + $0x10] sm:$0xff] %vm19_vm0, %v365_v0 }
   0x4   :  { %23 = vst.msk [vmem:[%s553_s5 + $0x18] sm:$0xff] %vm19_vm0, %v365_v0  ;;  %238 = sbr.rel (%p249_p0) target bundleno = 713 (0x2c9), region = 41 }
   0x5   :  { %24 = vst.msk [vmem:[%s553_s5 + $0x20] sm:$0xff] %vm19_vm0, %v365_v0 }
   0x6   :  { %25 = vst.msk [vmem:[%s553_s5 + $0x28] sm:$0xff] %vm19_vm0, %v365_v0 }
   0x7   :  { %26 = vst.msk [vmem:[%s553_s5 + $0x30] sm:$0xff] %vm19_vm0, %v365_v0 }
   0x8   :  { %27 = vst.msk [vmem:[%s553_s5 + $0x38] sm:$0xff] %vm19_vm0, %v365_v0 }
   0x9   :  { %v431_v2 = vmov 0.0   ;;  %v433_v3 = vmov 0.0   ;;  %v435_v4 = vmov 0.0   ;;  %v437_v5 = vmov 0.0  }
   0xa LB: > { %v53_v6 = vld [vmem:[%s551_s3 + $0x18] sm:$0xff]  ;;  %v52_v7 = vld [vmem:[%s551_s3 + $0x10] sm:$0xff]  ;;  %s366_s17 = smov 32   ;;  %v51_v8 = vld [vmem:[%s551_s3 + $0x8] sm:$0xff]  ;;  %vm57_vm1 = vcmask 261120   ;;  %v367_v16 = vmov 0   ;;  %v118_v25 = vstv %s363_s12  ;;  %s363_s12 = sphi %s439_s12, %s33_s12   ;;  %v359_v5 = vphi %v437_v5, %v125_v5   ;;  %v355_v4 = vphi %v435_v4, %v126_v4   ;;  %v351_v3 = vphi %v433_v3, %v202_v3   ;;  %v347_v2 = vphi %v431_v2, %v203_v2  }
   0xb   : > { %72 = vmatpush.msra.mxu0 %v53_v6  ;;  %55 = vrot.lane.b32.xlu0 %v359_v5, %s366_s17  ;;  %v50_v9 = vld [vmem:[%s551_s3] sm:$0xff]  ;;  %v131_v10 = vld [vmem:[%s552_s4 + $0x18] sm:$0xff]  ;;  %v130_v11 = vld [vmem:[%s552_s4 + $0x10] sm:$0xff]  ;;  %s261_s30 = sshll.u32 %s363_s12, 4  ;;  %s250_s7 = sadd.s32 4294967295, %s548_s0  ;;  %vm119_vm2 = vcmp.gt.s32.totalorder %v405_v1, %v118_v25  ;;  %vm218_vm14 = vcmask 523520  }
   0xc   : > { %149 = vmatpush.msra.mxu1 %v131_v10  ;;  %v129_v12 = vld [vmem:[%s552_s4 + $0x8] sm:$0xff]  ;;  %v128_v13 = vld [vmem:[%s552_s4] sm:$0xff]  ;;  %307 = vset.pattern.permute.xlu1 %v367_v16  ;;  %s44_s10 = scalar_lea.vmem %s550_s2, %s261_s30  ;;  %s496_s11 = ssub.s32 %s250_s7, %s363_s12  ;;  %v120_v26 = vsel %vm119_vm2, 1, %v367_v16 }
   0xd   : > { %73 = vmatpush.msra.mxu0 %v52_v7  ;;  %308 = vset.pattern.permute.xlu0 %v367_v16  ;;  %v45_v17 = vld [vmem:[%s44_s10] sm:$0xff]  ;;  %s262_s13 = sshll.u32 %s496_s11, 4  ;;  %s368_s18 = smov 64   ;;  %v195_v6 = vstv %s496_s11 }
   0xe   : > { %150 = vmatpush.msra.mxu1 %v130_v11  ;;  %s48_s16 = scalar_lea.vmem %s550_s2, %s262_s13  ;;  %vm196_vm12 = vcmp.gt.s32.totalorder %v405_v1, %v195_v6  ;;  %s259_s19 = sshll.u32 %s363_s12, 3 }
   0xf   : > { %74 = vmatpush.msra.mxu0 %v51_v8  ;;  %v49_v20 = vld [vmem:[%s48_s16 + $0x8] sm:$0xff]  ;;  %v197_v7 = vsel %vm196_vm12, 1, %v367_v16  ;;  %s260_s20 = sshll.u32 %s496_s11, 3  ;;  %s210_s23 = scalar_lea.vmem %s553_s5, %s259_s19 }
  0x10   : > { %151 = vmatpush.msra.mxu1 %v129_v12  ;;  %s33_s12 = sadd.s32 1, %s363_s12  }
  0x11   : > { %75 = vmatpush.msra.mxu0 %v50_v9  ;;  %p32_p1 = scmp.ge.s32.totalorder %s33_s12, %s548_s0 }
  0x12   : > { %152 = vmatpush.msra.mxu1 %v128_v13 }
  0x13   : > { %133 = vrot.lane.b32.xlu0 %v351_v3, %s366_s17 }
  0x7d   : > { %v56_v14 = vpop.permute.xlu0 %55 }
  0x7e   : > { %255 = vmatmul.msk.f32.vlgmr.msra.gmra.mxu0 %vm57_vm1, %v56_v14 }
  0x85   : > { %v134_v15 = vpop.permute.xlu0 %133 }
  0x86   : > { %257 = vmatmul.msk.f32.vlgmr.msra.gmra.mxu1 %vm57_vm1, %v134_v15 }
  0xfb   : > { %v77_v18 = vpop.f32.mrf.mxu0 }
  0xfc   : > { %v80_v19 = vadd.f32 %v77_v18, %v45_v17 }
  0xfe   : > { %309 = vtanh.f32 %v80_v19  ;;  %v256_v27 = vmul.f32 -1.442695, %v80_v19 }
 0x103   : > { %v154_v21 = vpop.f32.mrf.mxu1 }
 0x104   : > { %v310_v22 = vpop.eup %309  ;;  %v157_v23 = vadd.f32 %v154_v21, %v49_v20 }
 0x105   : > { %103 = vrot.lane.b32.xlu1 %v310_v22, %s368_s18 }
 0x106   : > { %311 = vtanh.f32 %v157_v23  ;;  %v258_v28 = vmul.f32 -1.442695, %v157_v23 }
 0x107   : > { %313 = vpow2.f32 %v256_v27 }
 0x108   : > { %315 = vpow2.f32 %v258_v28 }
 0x10c   : > { %v312_v24 = vpop.eup %311 }
 0x10d   : > { %180 = vrot.lane.b32.xlu1 %v312_v24, %s368_s18  ;;  %v314_v29 = vpop.eup %313 }
 0x10e   : > { %v84_v30 = vadd.f32 1.0, %v314_v29  ;;  %v316_v31 = vpop.eup %315 }
 0x10f   : > { %v161_v32 = vadd.f32 1.0, %v316_v31 }
 0x110   : > { %317 = vrcp.f32 %v84_v30  ;;  %v96_v41 = vand.u32 2147483648, %v84_v30  ;;  %vm90_vm4 = vweird.f32 %v84_v30  ;;  %v94_v42 = vand.u32 2147483647, %v84_v30 }
 0x111   : > { %319 = vrcp.f32 %v161_v32  ;;  %vm167_vm7 = vweird.f32 %v161_v32  ;;  %v173_v48 = vand.u32 2147483648, %v161_v32  ;;  %v171_v51 = vand.u32 2147483647, %v161_v32 }
 0x112   : > { %v97_v45 = vor.u32 1.1754944e-38, %v96_v41  ;;  %vm95_vm6 = vcmp.eq.f32.partialorder %v94_v42, 8.507059e+37 }
 0x113   : > { %v174_v52 = vor.u32 1.1754944e-38, %v173_v48  ;;  %vm172_vm10 = vcmp.eq.f32.partialorder %v171_v51, 8.507059e+37 }
 0x115   : > { %122 = vperm.xlu1 %307, %v120_v26  }
 0x116   : > { %v318_v33 = vpop.eup %317 }
 0x117   : > { %v86_v34 = vmul.f32 %v318_v33, %v84_v30  ;;  %v320_v36 = vpop.eup %319  ;;  %vm91_vm3 = vweird.f32 %v318_v33 }
 0x118   : > { %v163_v38 = vmul.f32 %v320_v36, %v161_v32  ;;  %vm92_vm5 = vmor %vm90_vm4, %vm91_vm3  ;;  %vm168_vm8 = vweird.f32 %v320_v36 }
 0x119   : > { %v87_v35 = vsub.f32 1.0, %v86_v34  ;;  %vm169_vm9 = vmor %vm167_vm7, %vm168_vm8 }
 0x11a   : > { %v164_v40 = vsub.f32 1.0, %v163_v38 }
 0x11b   : > { %v88_v37 = vmul.f32 %v318_v33, %v87_v35 }
 0x11c   : > { %v165_v44 = vmul.f32 %v320_v36, %v164_v40 }
 0x11d   : > { %v89_v39 = vadd.f32 %v318_v33, %v88_v37 }
 0x11e   : > { %v166_v50 = vadd.f32 %v320_v36, %v165_v44 }
 0x11f   : > { %v93_v43 = vsel %vm92_vm5, %v318_v33, %v89_v39 }
 0x120   : > { %v98_v47 = vsel %vm95_vm6, %v97_v45, %v93_v43  ;;  %v170_v53 = vsel %vm169_vm9, %v320_v36, %v166_v50 }
 0x121   : > { %v175_v55 = vsel %vm172_vm10, %v174_v52, %v170_v53  ;;  %v101_v58 = vmul.f32 %v355_v4, %v98_v47 }
 0x122   : > { %v178_v61 = vmul.f32 %v347_v2, %v175_v55 }
 0x177   : > { %v104_v46 = vpop.permute.xlu1 %103 }
 0x178   : > { %v106_v49 = vmul.f32 %v104_v46, %v98_v47 }
 0x17a   : > { %108 = vrot.lane.b32.xlu2 %v106_v49, %s366_s17 }
 0x17f   : > { %v181_v54 = vpop.permute.xlu1 %180 }
 0x180   : > { %v183_v56 = vmul.f32 %v181_v54, %v175_v55 }
 0x182   : > { %185 = vrot.lane.b32.xlu2 %v183_v56, %s366_s17 }
 0x187   : > { %v123_v57 = vpop.permute.xlu1 %122 }
 0x188   : > { %vm124_vm11 = vcmp.eq.s32.totalorder %v123_v57, 1 }
 0x1d4   : > { %v109_v59 = vpop.permute.xlu2 %108 }
 0x1d5   : > { %v111_v60 = vadd.f32 %v109_v59, %v101_v58 }
 0x1d7   : > { %321 = vtanh.f32 %v111_v60  ;;  %v126_v4 = vsel %vm124_vm11, %v111_v60, %v355_v4  }
 0x1dc   : > { %v186_v62 = vpop.permute.xlu2 %185 }
 0x1dd   : > { %v322_v63 = vpop.eup %321  ;;  %v188_v0 = vadd.f32 %v186_v62, %v178_v61 }
 0x1de   : > { %114 = vrot.lane.b32.xlu0 %v322_v63, %s368_s18 }
 0x1df   : > { %323 = vtanh.f32 %v188_v0 }
 0x1e5   : > { %v324_v8 = vpop.eup %323 }
 0x1e6   : > { %199 = vperm.xlu0 %308, %v197_v7   ;;  %191 = vrot.lane.b32.xlu2 %v324_v8, %s368_s18 }
 0x240   : > { %v192_v12 = vpop.permute.xlu2 %191 }
 0x241   : > { %v194_v13 = vmul.f32 %v192_v12, %v175_v55 }
 0x250   : > { %v115_v9 = vpop.permute.xlu0 %114 }
 0x251   : > { %v117_v10 = vmul.f32 %v115_v9, %v98_v47 }
 0x253   : > { %v125_v5 = vsel %vm124_vm11, %v117_v10, %v359_v5   ;;  %v127_v11 = vsel %vm124_vm11, %v117_v10, 0.0 }
 0x254   : > { %206 = vrot.lane.b32.xlu1 %v127_v11, %s366_s17  ;;  %s217_s17 = scalar_lea.vmem %s553_s5, %s260_s20 }
 0x258   : > { %v200_v14 = vpop.permute.xlu0 %199 }
 0x259   : > { %vm201_vm13 = vcmp.eq.s32.totalorder %v200_v14, 1 }
 0x25a   : > { %v202_v3 = vsel %vm201_vm13, %v194_v13, %v351_v3   ;;  %v203_v2 = vsel %vm201_vm13, %v188_v0, %v347_v2   ;;  %v204_v15 = vsel %vm201_vm13, %v194_v13, 0.0 }
 0x25b   : > { %213 = vrot.lane.b32.xlu2 %v204_v15, %s368_s18 }
 0x2b5   : > { %v214_v17 = vpop.permute.xlu2 %213 }
 0x2c4   :  { %35 = sbr.rel (!%p32_p1) target bundleno = 10 (0xa), region = 47 }
 0x2c6   : > { %v207_v16 = vpop.permute.xlu1 %206 }
 0x2c7   : > { %211 = vst.msk [vmem:[%s210_s23] sm:$0xff] %vm57_vm1, %v207_v16 }
 0x2c8   : > { %219 = vst.msk [vmem:[%s217_s17] sm:$0xff] %vm218_vm14, %v214_v17 }
 0x2c9 PF:  {}

</bundles_post_ra>
